<compile_context>
chip_gen: v7x
topology: tpu7x:2x2x1
jax: 0.10.0
libtpu: 0.0.40
codegen_flags: <defaults>
</compile_context>

<pallas_src>
import jax
import jax.numpy as jnp
from jax.experimental import pallas as pl
from jax.experimental.pallas import tpu as pltpu

_COMPUTE_DTYPE = jnp.bfloat16  # MXU-native inputs; accumulation stays f32.


# ---------------------------------------------------------------------------
# Fused kernel: embedding gather + fc1 + (folded reshape) + fc2
# ---------------------------------------------------------------------------
def _fc_fused_kernel(tok_ref, emb_ref, w1_ref, b1_ref, w2_ref, b2_ref,
                     o_ref, xbuf):
    # tok_ref : SMEM (B*L,) int32   scalar-prefetched token ids, row-major (b, l)
    # emb_ref : VMEM (V, D)  f32    full embedding table (one bulk DMA)
    # w1_ref  : VMEM (D, H)  bf16   b1_ref : VMEM (1, H) f32
    # w2_ref  : VMEM (L*H,N) bf16   b2_ref : VMEM (1, N) f32
    # o_ref   : VMEM (BB, N) f32    current batch block of logits
    # xbuf    : VMEM (BB*L, D) f32  gathered embeddings, rows stored l-major
    BB, N = o_ref.shape
    BL, D = xbuf.shape
    L = BL // BB
    H = w1_ref.shape[1]
    gb = pl.program_id(0)

    # 1) Embedding gather: table already sits in VMEM; pick the BB*L rows with
    #    cheap dynamic VMEM row reads (no per-row DMA descriptors / waits).
    #    Destination rows are l-major (row = l*BB + b) so the PyTorch
    #    (B, L, H) -> (B, L*H) reshape becomes static slices below.
    for l in range(L):
        for b in range(BB):
            tok = tok_ref[(gb * BB + b) * L + l]
            xbuf[pl.ds(l * BB + b, 1), :] = emb_ref[pl.ds(tok, 1), :]

    # 2) fc1 on the MXU: (BB*L, D) @ (D, H), bf16 inputs, f32 accumulation.
    #    Intermediate never touches HBM.
    x = xbuf[...].astype(_COMPUTE_DTYPE)
    h = jnp.dot(x, w1_ref[...], preferred_element_type=jnp.float32) + b1_ref[...]

    # 3) Folded reshape + fc2 as ONE MXU dot:
    #    h_flat[b, l*H + k] = h[l*BB + b, k]  (lane-axis concat of l-blocks),
    #    out = h_flat @ w2 + b2.
    h_flat = jnp.concatenate([h[l * BB:(l + 1) * BB, :] for l in range(L)],
                             axis=1)                          # (BB, L*H) f32
    out = jnp.dot(h_flat.astype(_COMPUTE_DTYPE), w2_ref[...],
                  preferred_element_type=jnp.float32) + b2_ref[...]

    # Single tiny masked store — the only HBM write of the kernel.
    o_ref[...] = out.astype(o_ref.dtype)


# ---------------------------------------------------------------------------
# Wrapper (mirrors PyTorch FC.forward)
# ---------------------------------------------------------------------------
def fc_forward(tokens, params):
    """tokens: (B, L) int32 -> logits (B, 3) float32 — one fused pallas_call."""
    B, L = tokens.shape
    emb = params["emb"]                              # (V, D) f32
    w1 = params["w1"].astype(_COMPUTE_DTYPE)         # (D, H)  -> bf16 (wrapper cast;
    b1 = params["b1"]                                #            in prod store bf16)
    w2 = params["w2"].astype(_COMPUTE_DTYPE)         # (L*H, N) -> bf16
    b2 = params["b2"]
    V, D = emb.shape
    H = w1.shape[1]
    N = w2.shape[1]

    # Batch block: amortizes per-call overhead when B grows; (BB, N) is a legal
    # output block (BB divisible by 8 or BB == B).
    BB = 8 if (B % 8 == 0) else B
    grid = (B // BB,)

    # Clamp ids -> defined behavior for any out-of-range token.
    tok_flat = jnp.clip(tokens.reshape(B * L), 0, V - 1).astype(jnp.int32)

    def _resident(shape):
        # Whole array in VMEM, same block every grid step (stays resident).
        return pl.BlockSpec(shape, lambda gb, tok_ref: tuple(0 for _ in shape))

    return pl.pallas_call(
        _fc_fused_kernel,
        out_shape=jax.ShapeDtypeStruct((B, N), jnp.float32),
        grid_spec=pltpu.PrefetchScalarGridSpec(
            num_scalar_prefetch=1,                   # token ids -> SMEM
            grid=grid,
            in_specs=[
                _resident((V, D)),                   # embedding table
                _resident((D, H)),                   # w1
                _resident((1, H)),                   # b1
                _resident((L * H, N)),               # w2
                _resident((1, N)),                   # b2
            ],
            out_specs=pl.BlockSpec((BB, N), lambda gb, tok_ref: (gb, 0)),
            scratch_shapes=[pltpu.VMEM((BB * L, D), jnp.float32)],
        ),
        compiler_params=pltpu.CompilerParams(
            dimension_semantics=("parallel",)),      # shards batch blocks on v7x's 2 TCs
    )(tok_flat, emb, w1, b1, w2, b2)


def init_params(key, vocab_size, d_model, max_words):
    h = d_model >> 4
    k1, k2, k3, k4, k5 = jax.random.split(key, 5)
    emb = jax.random.normal(k1, (vocab_size, d_model), jnp.float32)
    # nn.Linear(d_model, d_model>>4): weight (h, d_model) -> stored transposed.
    w1 = jax.random.normal(k2, (d_model, h), jnp.float32) * (1.0 / jnp.sqrt(d_model))
    b1 = jax.random.normal(k3, (1, h), jnp.float32) * 0.01
    # nn.Linear(h * max_words, 3): weight (3, h*max_words) -> stored transposed.
    w2 = jax.random.normal(k4, (h * max_words, 3), jnp.float32) * (1.0 / jnp.sqrt(h * max_words))
    b2 = jax.random.normal(k5, (1, 3), jnp.float32) * 0.01
    return {"emb": emb, "w1": w1, "b1": b1, "w2": w2, "b2": b2}


# ---------------------------------------------------------------------------
# Pure-JAX references for validation
# ---------------------------------------------------------------------------
def fc_forward_ref(tokens, params, compute_dtype=_COMPUTE_DTYPE):
    """Matched-precision reference (same bf16-in / f32-accumulate recipe)."""
    B, L = tokens.shape
    x = jnp.take(params["emb"], tokens, axis=0)                   # (B, L, D)
    h = jnp.einsum("bld,dh->blh",
                   x.astype(compute_dtype),
                   params["w1"].astype(compute_dtype),
                   preferred_element_type=jnp.float32) + params["b1"]
    h_flat = h.astype(compute_dtype).reshape(B, -1)               # (B, L*H)
    return jnp.dot(h_flat, params["w2"].astype(compute_dtype),
                   preferred_element_type=jnp.float32) + params["b2"]


def fc_forward_ref_f32(tokens, params):
    """Full-f32 reference (loose sanity check of the module semantics)."""
    B, L = tokens.shape
    x = jnp.take(params["emb"], tokens, axis=0)
    h = jnp.einsum("bld,dh->blh", x, params["w1"],
                   precision=jax.lax.Precision.HIGHEST) + params["b1"]
    h_flat = h.reshape(B, -1)
    return jnp.dot(h_flat, params["w2"],
                   precision=jax.lax.Precision.HIGHEST) + params["b2"]


if __name__ == "__main__":
    # Small config consistent with the module: d_model=256 -> hidden=16,
    # max_words=8, vocab=100, batch=2.
    VOCAB, D_MODEL, MAX_WORDS, BATCH = 100, 256, 8, 2

    key = jax.random.PRNGKey(0)
    kp, kt = jax.random.split(key)
    params = init_params(kp, VOCAB, D_MODEL, MAX_WORDS)
    tokens = jax.random.randint(kt, (BATCH, MAX_WORDS), 0, VOCAB, dtype=jnp.int32)

    out = jax.jit(fc_forward)(tokens, params)
    out = jax.block_until_ready(out)
    assert out.shape == (BATCH, 3), out.shape

    ref = fc_forward_ref(tokens, params)
    assert jnp.allclose(out, ref, atol=1e-3, rtol=1e-3), "mismatch vs matched-precision reference"

    ref32 = fc_forward_ref_f32(tokens, params)
    assert jnp.allclose(out, ref32, atol=1e-1, rtol=1e-1), "mismatch vs f32 reference"

    print("KERNEL_OK")
</pallas_src>

<mosaic_0001>
module attributes {stable_mosaic.version = 11 : i64} {
  func.func @_fc_fused_kernel(%arg0: i32, %arg1: memref<16xi32, #tpu.memory_space<smem>>, %arg2: memref<100x256xf32, #tpu.memory_space<vmem>>, %arg3: memref<256x16xbf16, #tpu.memory_space<vmem>>, %arg4: memref<1x16xf32, #tpu.memory_space<vmem>>, %arg5: memref<128x3xbf16, #tpu.memory_space<vmem>>, %arg6: memref<1x3xf32, #tpu.memory_space<vmem>>, %arg7: memref<2x3xf32, #tpu.memory_space<vmem>>, %arg8: memref<16x256xf32, #tpu.memory_space<vmem>>) attributes {dimension_semantics = [#tpu.dimension_semantics<parallel>], iteration_bounds = array<i64: 1>, scalar_prefetch = 1 : i64, scratch_operands = 1 : i64, tpu.core_type = #tpu.core_type<tc>, window_params = [{pipeline_mode = #tpu.pipeline_mode<synchronous>, transform_indices = @transform_0, window_bounds = array<i64: 100, 256>}, {pipeline_mode = #tpu.pipeline_mode<synchronous>, transform_indices = @transform_1, window_bounds = array<i64: 256, 16>}, {pipeline_mode = #tpu.pipeline_mode<synchronous>, transform_indices = @transform_2, window_bounds = array<i64: 1, 16>}, {pipeline_mode = #tpu.pipeline_mode<synchronous>, transform_indices = @transform_3, window_bounds = array<i64: 128, 3>}, {pipeline_mode = #tpu.pipeline_mode<synchronous>, transform_indices = @transform_4, window_bounds = array<i64: 1, 3>}, {transform_indices = @transform_5, window_bounds = array<i64: 2, 3>}]} {
    %c2_i32 = arith.constant 2 : i32
    %0 = arith.muli %arg0, %c2_i32 : i32
    %c0_i32 = arith.constant 0 : i32
    %1 = arith.addi %0, %c0_i32 : i32
    %c8_i32 = arith.constant 8 : i32
    %2 = arith.muli %1, %c8_i32 : i32
    %c0_i32_0 = arith.constant 0 : i32
    %3 = arith.addi %2, %c0_i32_0 : i32
    %4 = arith.index_cast %3 : i32 to index
    %5 = memref.load %arg1[%4] : memref<16xi32, #tpu.memory_space<smem>>
    %6 = arith.index_cast %5 : i32 to index
    %c0 = arith.constant 0 : index
    %7 = vector.load %arg2[%6, %c0] : memref<100x256xf32, #tpu.memory_space<vmem>>, vector<1x256xf32>
    %c0_1 = arith.constant 0 : index
    %c0_2 = arith.constant 0 : index
    %8 = vector.load %arg8[%c0_1, %c0_2] : memref<16x256xf32, #tpu.memory_space<vmem>>, vector<1x256xf32>
    tpu.vector_store %arg8[%c0_1, %c0_2], %7 {strides = array<i32>} : memref<16x256xf32, #tpu.memory_space<vmem>>, vector<1x256xf32>,
    %c2_i32_3 = arith.constant 2 : i32
    %9 = arith.muli %arg0, %c2_i32_3 : i32
    %c1_i32 = arith.constant 1 : i32
    %10 = arith.addi %9, %c1_i32 : i32
    %c8_i32_4 = arith.constant 8 : i32
    %11 = arith.muli %10, %c8_i32_4 : i32
    %c0_i32_5 = arith.constant 0 : i32
    %12 = arith.addi %11, %c0_i32_5 : i32
    %13 = arith.index_cast %12 : i32 to index
    %14 = memref.load %arg1[%13] : memref<16xi32, #tpu.memory_space<smem>>
    %15 = arith.index_cast %14 : i32 to index
    %c0_6 = arith.constant 0 : index
    %16 = vector.load %arg2[%15, %c0_6] : memref<100x256xf32, #tpu.memory_space<vmem>>, vector<1x256xf32>
    %c1 = arith.constant 1 : index
    %c0_7 = arith.constant 0 : index
    %17 = vector.load %arg8[%c1, %c0_7] : memref<16x256xf32, #tpu.memory_space<vmem>>, vector<1x256xf32>
    tpu.vector_store %arg8[%c1, %c0_7], %16 {strides = array<i32>} : memref<16x256xf32, #tpu.memory_space<vmem>>, vector<1x256xf32>,
    %c2_i32_8 = arith.constant 2 : i32
    %18 = arith.muli %arg0, %c2_i32_8 : i32
    %c0_i32_9 = arith.constant 0 : i32
    %19 = arith.addi %18, %c0_i32_9 : i32
    %c8_i32_10 = arith.constant 8 : i32
    %20 = arith.muli %19, %c8_i32_10 : i32
    %c1_i32_11 = arith.constant 1 : i32
    %21 = arith.addi %20, %c1_i32_11 : i32
    %22 = arith.index_cast %21 : i32 to index
    %23 = memref.load %arg1[%22] : memref<16xi32, #tpu.memory_space<smem>>
    %24 = arith.index_cast %23 : i32 to index
    %c0_12 = arith.constant 0 : index
    %25 = vector.load %arg2[%24, %c0_12] : memref<100x256xf32, #tpu.memory_space<vmem>>, vector<1x256xf32>
    %c2 = arith.constant 2 : index
    %c0_13 = arith.constant 0 : index
    %26 = vector.load %arg8[%c2, %c0_13] : memref<16x256xf32, #tpu.memory_space<vmem>>, vector<1x256xf32>
    tpu.vector_store %arg8[%c2, %c0_13], %25 {strides = array<i32>} : memref<16x256xf32, #tpu.memory_space<vmem>>, vector<1x256xf32>,
    %c2_i32_14 = arith.constant 2 : i32
    %27 = arith.muli %arg0, %c2_i32_14 : i32
    %c1_i32_15 = arith.constant 1 : i32
    %28 = arith.addi %27, %c1_i32_15 : i32
    %c8_i32_16 = arith.constant 8 : i32
    %29 = arith.muli %28, %c8_i32_16 : i32
    %c1_i32_17 = arith.constant 1 : i32
    %30 = arith.addi %29, %c1_i32_17 : i32
    %31 = arith.index_cast %30 : i32 to index
    %32 = memref.load %arg1[%31] : memref<16xi32, #tpu.memory_space<smem>>
    %33 = arith.index_cast %32 : i32 to index
    %c0_18 = arith.constant 0 : index
    %34 = vector.load %arg2[%33, %c0_18] : memref<100x256xf32, #tpu.memory_space<vmem>>, vector<1x256xf32>
    %c3 = arith.constant 3 : index
    %c0_19 = arith.constant 0 : index
    %35 = vector.load %arg8[%c3, %c0_19] : memref<16x256xf32, #tpu.memory_space<vmem>>, vector<1x256xf32>
    tpu.vector_store %arg8[%c3, %c0_19], %34 {strides = array<i32>} : memref<16x256xf32, #tpu.memory_space<vmem>>, vector<1x256xf32>,
    %c2_i32_20 = arith.constant 2 : i32
    %36 = arith.muli %arg0, %c2_i32_20 : i32
    %c0_i32_21 = arith.constant 0 : i32
    %37 = arith.addi %36, %c0_i32_21 : i32
    %c8_i32_22 = arith.constant 8 : i32
    %38 = arith.muli %37, %c8_i32_22 : i32
    %c2_i32_23 = arith.constant 2 : i32
    %39 = arith.addi %38, %c2_i32_23 : i32
    %40 = arith.index_cast %39 : i32 to index
    %41 = memref.load %arg1[%40] : memref<16xi32, #tpu.memory_space<smem>>
    %42 = arith.index_cast %41 : i32 to index
    %c0_24 = arith.constant 0 : index
    %43 = vector.load %arg2[%42, %c0_24] : memref<100x256xf32, #tpu.memory_space<vmem>>, vector<1x256xf32>
    %c4 = arith.constant 4 : index
    %c0_25 = arith.constant 0 : index
    %44 = vector.load %arg8[%c4, %c0_25] : memref<16x256xf32, #tpu.memory_space<vmem>>, vector<1x256xf32>
    tpu.vector_store %arg8[%c4, %c0_25], %43 {strides = array<i32>} : memref<16x256xf32, #tpu.memory_space<vmem>>, vector<1x256xf32>,
    %c2_i32_26 = arith.constant 2 : i32
    %45 = arith.muli %arg0, %c2_i32_26 : i32
    %c1_i32_27 = arith.constant 1 : i32
    %46 = arith.addi %45, %c1_i32_27 : i32
    %c8_i32_28 = arith.constant 8 : i32
    %47 = arith.muli %46, %c8_i32_28 : i32
    %c2_i32_29 = arith.constant 2 : i32
    %48 = arith.addi %47, %c2_i32_29 : i32
    %49 = arith.index_cast %48 : i32 to index
    %50 = memref.load %arg1[%49] : memref<16xi32, #tpu.memory_space<smem>>
    %51 = arith.index_cast %50 : i32 to index
    %c0_30 = arith.constant 0 : index
    %52 = vector.load %arg2[%51, %c0_30] : memref<100x256xf32, #tpu.memory_space<vmem>>, vector<1x256xf32>
    %c5 = arith.constant 5 : index
    %c0_31 = arith.constant 0 : index
    %53 = vector.load %arg8[%c5, %c0_31] : memref<16x256xf32, #tpu.memory_space<vmem>>, vector<1x256xf32>
    tpu.vector_store %arg8[%c5, %c0_31], %52 {strides = array<i32>} : memref<16x256xf32, #tpu.memory_space<vmem>>, vector<1x256xf32>,
    %c2_i32_32 = arith.constant 2 : i32
    %54 = arith.muli %arg0, %c2_i32_32 : i32
    %c0_i32_33 = arith.constant 0 : i32
    %55 = arith.addi %54, %c0_i32_33 : i32
    %c8_i32_34 = arith.constant 8 : i32
    %56 = arith.muli %55, %c8_i32_34 : i32
    %c3_i32 = arith.constant 3 : i32
    %57 = arith.addi %56, %c3_i32 : i32
    %58 = arith.index_cast %57 : i32 to index
    %59 = memref.load %arg1[%58] : memref<16xi32, #tpu.memory_space<smem>>
    %60 = arith.index_cast %59 : i32 to index
    %c0_35 = arith.constant 0 : index
    %61 = vector.load %arg2[%60, %c0_35] : memref<100x256xf32, #tpu.memory_space<vmem>>, vector<1x256xf32>
    %c6 = arith.constant 6 : index
    %c0_36 = arith.constant 0 : index
    %62 = vector.load %arg8[%c6, %c0_36] : memref<16x256xf32, #tpu.memory_space<vmem>>, vector<1x256xf32>
    tpu.vector_store %arg8[%c6, %c0_36], %61 {strides = array<i32>} : memref<16x256xf32, #tpu.memory_space<vmem>>, vector<1x256xf32>,
    %c2_i32_37 = arith.constant 2 : i32
    %63 = arith.muli %arg0, %c2_i32_37 : i32
    %c1_i32_38 = arith.constant 1 : i32
    %64 = arith.addi %63, %c1_i32_38 : i32
    %c8_i32_39 = arith.constant 8 : i32
    %65 = arith.muli %64, %c8_i32_39 : i32
    %c3_i32_40 = arith.constant 3 : i32
    %66 = arith.addi %65, %c3_i32_40 : i32
    %67 = arith.index_cast %66 : i32 to index
    %68 = memref.load %arg1[%67] : memref<16xi32, #tpu.memory_space<smem>>
    %69 = arith.index_cast %68 : i32 to index
    %c0_41 = arith.constant 0 : index
    %70 = vector.load %arg2[%69, %c0_41] : memref<100x256xf32, #tpu.memory_space<vmem>>, vector<1x256xf32>
    %c7 = arith.constant 7 : index
    %c0_42 = arith.constant 0 : index
    %71 = vector.load %arg8[%c7, %c0_42] : memref<16x256xf32, #tpu.memory_space<vmem>>, vector<1x256xf32>
    tpu.vector_store %arg8[%c7, %c0_42], %70 {strides = array<i32>} : memref<16x256xf32, #tpu.memory_space<vmem>>, vector<1x256xf32>,
    %c2_i32_43 = arith.constant 2 : i32
    %72 = arith.muli %arg0, %c2_i32_43 : i32
    %c0_i32_44 = arith.constant 0 : i32
    %73 = arith.addi %72, %c0_i32_44 : i32
    %c8_i32_45 = arith.constant 8 : i32
    %74 = arith.muli %73, %c8_i32_45 : i32
    %c4_i32 = arith.constant 4 : i32
    %75 = arith.addi %74, %c4_i32 : i32
    %76 = arith.index_cast %75 : i32 to index
    %77 = memref.load %arg1[%76] : memref<16xi32, #tpu.memory_space<smem>>
    %78 = arith.index_cast %77 : i32 to index
    %c0_46 = arith.constant 0 : index
    %79 = vector.load %arg2[%78, %c0_46] : memref<100x256xf32, #tpu.memory_space<vmem>>, vector<1x256xf32>
    %c8 = arith.constant 8 : index
    %c0_47 = arith.constant 0 : index
    %80 = vector.load %arg8[%c8, %c0_47] : memref<16x256xf32, #tpu.memory_space<vmem>>, vector<1x256xf32>
    tpu.vector_store %arg8[%c8, %c0_47], %79 {strides = array<i32>} : memref<16x256xf32, #tpu.memory_space<vmem>>, vector<1x256xf32>,
    %c2_i32_48 = arith.constant 2 : i32
    %81 = arith.muli %arg0, %c2_i32_48 : i32
    %c1_i32_49 = arith.constant 1 : i32
    %82 = arith.addi %81, %c1_i32_49 : i32
    %c8_i32_50 = arith.constant 8 : i32
    %83 = arith.muli %82, %c8_i32_50 : i32
    %c4_i32_51 = arith.constant 4 : i32
    %84 = arith.addi %83, %c4_i32_51 : i32
    %85 = arith.index_cast %84 : i32 to index
    %86 = memref.load %arg1[%85] : memref<16xi32, #tpu.memory_space<smem>>
    %87 = arith.index_cast %86 : i32 to index
    %c0_52 = arith.constant 0 : index
    %88 = vector.load %arg2[%87, %c0_52] : memref<100x256xf32, #tpu.memory_space<vmem>>, vector<1x256xf32>
    %c9 = arith.constant 9 : index
    %c0_53 = arith.constant 0 : index
    %89 = vector.load %arg8[%c9, %c0_53] : memref<16x256xf32, #tpu.memory_space<vmem>>, vector<1x256xf32>
    tpu.vector_store %arg8[%c9, %c0_53], %88 {strides = array<i32>} : memref<16x256xf32, #tpu.memory_space<vmem>>, vector<1x256xf32>,
    %c2_i32_54 = arith.constant 2 : i32
    %90 = arith.muli %arg0, %c2_i32_54 : i32
    %c0_i32_55 = arith.constant 0 : i32
    %91 = arith.addi %90, %c0_i32_55 : i32
    %c8_i32_56 = arith.constant 8 : i32
    %92 = arith.muli %91, %c8_i32_56 : i32
    %c5_i32 = arith.constant 5 : i32
    %93 = arith.addi %92, %c5_i32 : i32
    %94 = arith.index_cast %93 : i32 to index
    %95 = memref.load %arg1[%94] : memref<16xi32, #tpu.memory_space<smem>>
    %96 = arith.index_cast %95 : i32 to index
    %c0_57 = arith.constant 0 : index
    %97 = vector.load %arg2[%96, %c0_57] : memref<100x256xf32, #tpu.memory_space<vmem>>, vector<1x256xf32>
    %c10 = arith.constant 10 : index
    %c0_58 = arith.constant 0 : index
    %98 = vector.load %arg8[%c10, %c0_58] : memref<16x256xf32, #tpu.memory_space<vmem>>, vector<1x256xf32>
    tpu.vector_store %arg8[%c10, %c0_58], %97 {strides = array<i32>} : memref<16x256xf32, #tpu.memory_space<vmem>>, vector<1x256xf32>,
    %c2_i32_59 = arith.constant 2 : i32
    %99 = arith.muli %arg0, %c2_i32_59 : i32
    %c1_i32_60 = arith.constant 1 : i32
    %100 = arith.addi %99, %c1_i32_60 : i32
    %c8_i32_61 = arith.constant 8 : i32
    %101 = arith.muli %100, %c8_i32_61 : i32
    %c5_i32_62 = arith.constant 5 : i32
    %102 = arith.addi %101, %c5_i32_62 : i32
    %103 = arith.index_cast %102 : i32 to index
    %104 = memref.load %arg1[%103] : memref<16xi32, #tpu.memory_space<smem>>
    %105 = arith.index_cast %104 : i32 to index
    %c0_63 = arith.constant 0 : index
    %106 = vector.load %arg2[%105, %c0_63] : memref<100x256xf32, #tpu.memory_space<vmem>>, vector<1x256xf32>
    %c11 = arith.constant 11 : index
    %c0_64 = arith.constant 0 : index
    %107 = vector.load %arg8[%c11, %c0_64] : memref<16x256xf32, #tpu.memory_space<vmem>>, vector<1x256xf32>
    tpu.vector_store %arg8[%c11, %c0_64], %106 {strides = array<i32>} : memref<16x256xf32, #tpu.memory_space<vmem>>, vector<1x256xf32>,
    %c2_i32_65 = arith.constant 2 : i32
    %108 = arith.muli %arg0, %c2_i32_65 : i32
    %c0_i32_66 = arith.constant 0 : i32
    %109 = arith.addi %108, %c0_i32_66 : i32
    %c8_i32_67 = arith.constant 8 : i32
    %110 = arith.muli %109, %c8_i32_67 : i32
    %c6_i32 = arith.constant 6 : i32
    %111 = arith.addi %110, %c6_i32 : i32
    %112 = arith.index_cast %111 : i32 to index
    %113 = memref.load %arg1[%112] : memref<16xi32, #tpu.memory_space<smem>>
    %114 = arith.index_cast %113 : i32 to index
    %c0_68 = arith.constant 0 : index
    %115 = vector.load %arg2[%114, %c0_68] : memref<100x256xf32, #tpu.memory_space<vmem>>, vector<1x256xf32>
    %c12 = arith.constant 12 : index
    %c0_69 = arith.constant 0 : index
    %116 = vector.load %arg8[%c12, %c0_69] : memref<16x256xf32, #tpu.memory_space<vmem>>, vector<1x256xf32>
    tpu.vector_store %arg8[%c12, %c0_69], %115 {strides = array<i32>} : memref<16x256xf32, #tpu.memory_space<vmem>>, vector<1x256xf32>,
    %c2_i32_70 = arith.constant 2 : i32
    %117 = arith.muli %arg0, %c2_i32_70 : i32
    %c1_i32_71 = arith.constant 1 : i32
    %118 = arith.addi %117, %c1_i32_71 : i32
    %c8_i32_72 = arith.constant 8 : i32
    %119 = arith.muli %118, %c8_i32_72 : i32
    %c6_i32_73 = arith.constant 6 : i32
    %120 = arith.addi %119, %c6_i32_73 : i32
    %121 = arith.index_cast %120 : i32 to index
    %122 = memref.load %arg1[%121] : memref<16xi32, #tpu.memory_space<smem>>
    %123 = arith.index_cast %122 : i32 to index
    %c0_74 = arith.constant 0 : index
    %124 = vector.load %arg2[%123, %c0_74] : memref<100x256xf32, #tpu.memory_space<vmem>>, vector<1x256xf32>
    %c13 = arith.constant 13 : index
    %c0_75 = arith.constant 0 : index
    %125 = vector.load %arg8[%c13, %c0_75] : memref<16x256xf32, #tpu.memory_space<vmem>>, vector<1x256xf32>
    tpu.vector_store %arg8[%c13, %c0_75], %124 {strides = array<i32>} : memref<16x256xf32, #tpu.memory_space<vmem>>, vector<1x256xf32>,
    %c2_i32_76 = arith.constant 2 : i32
    %126 = arith.muli %arg0, %c2_i32_76 : i32
    %c0_i32_77 = arith.constant 0 : i32
    %127 = arith.addi %126, %c0_i32_77 : i32
    %c8_i32_78 = arith.constant 8 : i32
    %128 = arith.muli %127, %c8_i32_78 : i32
    %c7_i32 = arith.constant 7 : i32
    %129 = arith.addi %128, %c7_i32 : i32
    %130 = arith.index_cast %129 : i32 to index
    %131 = memref.load %arg1[%130] : memref<16xi32, #tpu.memory_space<smem>>
    %132 = arith.index_cast %131 : i32 to index
    %c0_79 = arith.constant 0 : index
    %133 = vector.load %arg2[%132, %c0_79] : memref<100x256xf32, #tpu.memory_space<vmem>>, vector<1x256xf32>
    %c14 = arith.constant 14 : index
    %c0_80 = arith.constant 0 : index
    %134 = vector.load %arg8[%c14, %c0_80] : memref<16x256xf32, #tpu.memory_space<vmem>>, vector<1x256xf32>
    tpu.vector_store %arg8[%c14, %c0_80], %133 {strides = array<i32>} : memref<16x256xf32, #tpu.memory_space<vmem>>, vector<1x256xf32>,
    %c2_i32_81 = arith.constant 2 : i32
    %135 = arith.muli %arg0, %c2_i32_81 : i32
    %c1_i32_82 = arith.constant 1 : i32
    %136 = arith.addi %135, %c1_i32_82 : i32
    %c8_i32_83 = arith.constant 8 : i32
    %137 = arith.muli %136, %c8_i32_83 : i32
    %c7_i32_84 = arith.constant 7 : i32
    %138 = arith.addi %137, %c7_i32_84 : i32
    %139 = arith.index_cast %138 : i32 to index
    %140 = memref.load %arg1[%139] : memref<16xi32, #tpu.memory_space<smem>>
    %141 = arith.index_cast %140 : i32 to index
    %c0_85 = arith.constant 0 : index
    %142 = vector.load %arg2[%141, %c0_85] : memref<100x256xf32, #tpu.memory_space<vmem>>, vector<1x256xf32>
    %c15 = arith.constant 15 : index
    %c0_86 = arith.constant 0 : index
    %143 = vector.load %arg8[%c15, %c0_86] : memref<16x256xf32, #tpu.memory_space<vmem>>, vector<1x256xf32>
    tpu.vector_store %arg8[%c15, %c0_86], %142 {strides = array<i32>} : memref<16x256xf32, #tpu.memory_space<vmem>>, vector<1x256xf32>,
    %c0_87 = arith.constant 0 : index
    %c0_88 = arith.constant 0 : index
    %144 = vector.load %arg8[%c0_87, %c0_88] : memref<16x256xf32, #tpu.memory_space<vmem>>, vector<16x256xf32>
    %145 = arith.truncf %144 : vector<16x256xf32> to vector<16x256xbf16>
    %c0_89 = arith.constant 0 : index
    %c0_90 = arith.constant 0 : index
    %146 = vector.load %arg3[%c0_89, %c0_90] : memref<256x16xbf16, #tpu.memory_space<vmem>>, vector<256x16xbf16>
    %cst = arith.constant dense<0.000000e+00> : vector<16x16xf32>
    %147 = tpu.matmul %145, %146, %cst {dimension_numbers = #tpu.dot_dimension_numbers<[1], [0], [0], [1], [0, 0, 1, 1], [], []>} : vector<16x256xbf16>, vector<256x16xbf16>, vector<16x16xf32> -> vector<16x16xf32>
    %c0_91 = arith.constant 0 : index
    %c0_92 = arith.constant 0 : index
    %148 = vector.load %arg4[%c0_91, %c0_92] : memref<1x16xf32, #tpu.memory_space<vmem>>, vector<1x16xf32>
    %149 = vector.broadcast %148 : vector<1x16xf32> to vector<16x16xf32>
    %150 = arith.addf %147, %149 : vector<16x16xf32>
    %151 = vector.extract_strided_slice %150 {offsets = [0, 0], sizes = [2, 16], strides = [1, 1]} : vector<16x16xf32> to vector<2x16xf32>
    %152 = vector.extract_strided_slice %150 {offsets = [2, 0], sizes = [2, 16], strides = [1, 1]} : vector<16x16xf32> to vector<2x16xf32>
    %153 = vector.extract_strided_slice %150 {offsets = [4, 0], sizes = [2, 16], strides = [1, 1]} : vector<16x16xf32> to vector<2x16xf32>
    %154 = vector.extract_strided_slice %150 {offsets = [6, 0], sizes = [2, 16], strides = [1, 1]} : vector<16x16xf32> to vector<2x16xf32>
    %155 = vector.extract_strided_slice %150 {offsets = [8, 0], sizes = [2, 16], strides = [1, 1]} : vector<16x16xf32> to vector<2x16xf32>
    %156 = vector.extract_strided_slice %150 {offsets = [10, 0], sizes = [2, 16], strides = [1, 1]} : vector<16x16xf32> to vector<2x16xf32>
    %157 = vector.extract_strided_slice %150 {offsets = [12, 0], sizes = [2, 16], strides = [1, 1]} : vector<16x16xf32> to vector<2x16xf32>
    %158 = vector.extract_strided_slice %150 {offsets = [14, 0], sizes = [2, 16], strides = [1, 1]} : vector<16x16xf32> to vector<2x16xf32>
    %159 = tpu.concatenate %151, %152, %153, %154, %155, %156, %157, %158 in 1 : vector<2x16xf32>, vector<2x16xf32>, vector<2x16xf32>, vector<2x16xf32>, vector<2x16xf32>, vector<2x16xf32>, vector<2x16xf32>, vector<2x16xf32> -> vector<2x128xf32>
    %160 = arith.truncf %159 : vector<2x128xf32> to vector<2x128xbf16>
    %c0_93 = arith.constant 0 : index
    %c0_94 = arith.constant 0 : index
    %161 = vector.load %arg5[%c0_93, %c0_94] : memref<128x3xbf16, #tpu.memory_space<vmem>>, vector<128x3xbf16>
    %cst_95 = arith.constant dense<0.000000e+00> : vector<2x3xf32>
    %162 = tpu.matmul %160, %161, %cst_95 {dimension_numbers = #tpu.dot_dimension_numbers<[1], [0], [0], [1], [0, 0, 1, 1], [], []>} : vector<2x128xbf16>, vector<128x3xbf16>, vector<2x3xf32> -> vector<2x3xf32>
    %c0_96 = arith.constant 0 : index
    %c0_97 = arith.constant 0 : index
    %163 = vector.load %arg6[%c0_96, %c0_97] : memref<1x3xf32, #tpu.memory_space<vmem>>, vector<1x3xf32>
    %164 = vector.broadcast %163 : vector<1x3xf32> to vector<2x3xf32>
    %165 = arith.addf %162, %164 : vector<2x3xf32>
    %c0_98 = arith.constant 0 : index
    %c0_99 = arith.constant 0 : index
    %166 = vector.load %arg7[%c0_98, %c0_99] : memref<2x3xf32, #tpu.memory_space<vmem>>, vector<2x3xf32>
    tpu.vector_store %arg7[%c0_98, %c0_99], %165 {strides = array<i32>} : memref<2x3xf32, #tpu.memory_space<vmem>>, vector<2x3xf32>,
    return
  }
  func.func @transform_0(%arg0: i32, %arg1: memref<16xi32, #tpu.memory_space<smem>>) -> (i32, i32) {
    %c0_i32 = arith.constant 0 : i32
    %c0_i32_0 = arith.constant 0 : i32
    %c0_i32_1 = arith.constant 0 : i32
    return %c0_i32, %c0_i32_0 : i32, i32
  }
  func.func @transform_1(%arg0: i32, %arg1: memref<16xi32, #tpu.memory_space<smem>>) -> (i32, i32) {
    %c0_i32 = arith.constant 0 : i32
    %c0_i32_0 = arith.constant 0 : i32
    %c0_i32_1 = arith.constant 0 : i32
    return %c0_i32, %c0_i32_0 : i32, i32
  }
  func.func @transform_2(%arg0: i32, %arg1: memref<16xi32, #tpu.memory_space<smem>>) -> (i32, i32) {
    %c0_i32 = arith.constant 0 : i32
    %c0_i32_0 = arith.constant 0 : i32
    %c0_i32_1 = arith.constant 0 : i32
    return %c0_i32, %c0_i32_0 : i32, i32
  }
  func.func @transform_3(%arg0: i32, %arg1: memref<16xi32, #tpu.memory_space<smem>>) -> (i32, i32) {
    %c0_i32 = arith.constant 0 : i32
    %c0_i32_0 = arith.constant 0 : i32
    %c0_i32_1 = arith.constant 0 : i32
    return %c0_i32, %c0_i32_0 : i32, i32
  }
  func.func @transform_4(%arg0: i32, %arg1: memref<16xi32, #tpu.memory_space<smem>>) -> (i32, i32) {
    %c0_i32 = arith.constant 0 : i32
    %c0_i32_0 = arith.constant 0 : i32
    %c0_i32_1 = arith.constant 0 : i32
    return %c0_i32, %c0_i32_0 : i32, i32
  }
  func.func @transform_5(%arg0: i32, %arg1: memref<16xi32, #tpu.memory_space<smem>>) -> (i32, i32) {
    %c0_i32 = arith.constant 0 : i32
    %c0_i32_0 = arith.constant 0 : i32
    return %arg0, %c0_i32 : i32, i32
  }
}

</mosaic_0001>

<bundles_post_ra>
// kernel: fc_forward.1
= control target key start
LH: loop header
LB: loop body
LE: loop exit
PB: predicated region body
PF: predicated region fallthrough
CT: control target
= control target key end

     0   :  { %s1139_s0 = inlined_call_operand.vmem [shape: s32[16], index: 0, kind: input, shape index: {}]   ;;  %s1140_s1 = inlined_call_operand.vmem [shape: f32[100,256], index: 1, kind: input, shape index: {}]   ;;  %s1141_s2 = inlined_call_operand.vmem [shape: bf16[256,16], index: 2, kind: input, shape index: {}]   ;;  %s1142_s3 = inlined_call_operand.vmem [shape: f32[1,16], index: 3, kind: input, shape index: {}]   ;;  %s1143_s4 = inlined_call_operand.vmem [shape: bf16[128,3], index: 4, kind: input, shape index: {}]   ;;  %s1144_s5 = inlined_call_operand.vmem [shape: f32[1,3], index: 5, kind: input, shape index: {}]   ;;  %s1145_s6 = inlined_call_operand.hbm [shape: f32[2,3], index: 6, kind: output, shape index: {}]  }
   0x1   :  { %1147 = sst [smem:[#allocation9_spill]] %s1144_s5  ;;  %s11_s23 = sshll.u32 %s1139_s0, 4  ;;  %s12_s23 = int_to_ptr.vmem [resolvable:$true] %s11_s23 }
   0x2   :  { %1148 = sst [smem:[#allocation10_spill]] %s1145_s6  ;;  %s834_s24 = scalar_lea.vmem %s12_s23, 16 }
   0x3   :  { %p835_p0 = scmp.ne.s32.totalorder %s12_s23, %s834_s24  ;;  %p839_p1 = scmp.lt.s32.totalorder %s12_s23, %s12_s23 }
   0x4   :  { %p840_p2 = scmp.lt.s32.totalorder %s834_s24, %s834_s24 }
   0x6   :  { %p841_p3 = por %p840_p2, %p839_p1 }
   0x8   :  { %p842_p4 = pnand %p841_p3, %p835_p0 }
   0xa   :  { %845 = shalt.err (!%p842_p4)  }
   0xb   :  { %s872_s25 = smov [#allocation4]  }
   0xc   :  { %14 = dma.vmem_to_smem %s12_s23, 16, %s872_s25, [#allocation3] }
   0xd   :  { %868 = dma.done.wait [#allocation3], 16 }
   0xe   :  { %869 = vsyncadd [#allocation3], 4294967280 }
   0xf   :  { %16 = sfence }
  0x10   :  { %v810_v0 = vld [vmem:[%s1141_s2 + $0x40] sm:$0xff]   ;;  %v812_v2 = vld [vmem:[%s1141_s2 + $0x48] sm:$0xff]   ;;  %v814_v4 = vld [vmem:[%s1141_s2 + $0x50] sm:$0xff]   ;;  %v40_v9 = vlaneseq  ;;  %s30_s23 = sld [smem:[#allocation4]]  ;;  %s963_s27 = sld [smem:[#allocation4 + $0x1]] }
  0x11   :  { %v811_v1 = vld [vmem:[%s1141_s2] sm:$0xff]   ;;  %748 = vmatprep.subr.bf16.mxu0 %v810_v0  ;;  %v813_v3 = vld [vmem:[%s1141_s2 + $0x8] sm:$0xff]   ;;  %v815_v5 = vld [vmem:[%s1141_s2 + $0x10] sm:$0xff]   ;;  %s958_s24 = sld [smem:[#allocation4 + $0x8]]  ;;  %s965_s28 = sld [smem:[#allocation4 + $0x9]] }
  0x12   :  { %749 = vmatpush3.bf16.msra.mxu0 %v811_v1  ;;  %v816_v6 = vld [vmem:[%s1141_s2 + $0x58] sm:$0xff]   ;;  %v818_v8 = vld [vmem:[%s1141_s2 + $0x60] sm:$0xff]   ;;  %v820_v11 = vld [vmem:[%s1141_s2 + $0x68] sm:$0xff]   ;;  %vm954_vm0 = vcmp.lt.s32.totalorder %v40_v9, 256  ;;  %s970_s30 = sld [smem:[#allocation4 + $0x2]]  ;;  %s974_s8 = sld [smem:[#allocation4 + $0x3]] }
  0x13   :  { %750 = vmatprep.subr.bf16.mxu0 %v812_v2  ;;  %v817_v7 = vld [vmem:[%s1141_s2 + $0x18] sm:$0xff]   ;;  %v819_v10 = vld [vmem:[%s1141_s2 + $0x20] sm:$0xff]   ;;  %v821_v13 = vld [vmem:[%s1141_s2 + $0x28] sm:$0xff]   ;;  %s972_s7 = sld [smem:[#allocation4 + $0xa]]  ;;  %s976_s9 = sld [smem:[#allocation4 + $0xb]] }
  0x14   :  { %v822_v14 = vld [vmem:[%s1141_s2 + $0x70] sm:$0xff]   ;;  %s978_s10 = sld [smem:[#allocation4 + $0x4]]  ;;  %s985_s14 = sld [smem:[#allocation4 + $0x5]]  ;;  %v824_v16 = vld [vmem:[%s1141_s2 + $0x78] sm:$0xff]  }
  0x15   :  { %s980_s11 = sld [smem:[#allocation4 + $0xc]]  ;;  %v823_v15 = vld [vmem:[%s1141_s2 + $0x30] sm:$0xff]   ;;  %s987_s15 = sld [smem:[#allocation4 + $0xd]]  ;;  %v825_v18 = vld [vmem:[%s1141_s2 + $0x38] sm:$0xff]  }
  0x16   :  { %751 = vmatpush3.bf16.msra.mxu0 %v813_v3  ;;  %s31_s16 = sshra.s32 %s30_s23, 3  ;;  %s34_s17 = sand.u32 7, %s30_s23 }
  0x17   :  { %752 = vmatprep.subr.bf16.mxu0 %v814_v4  ;;  %s732_s18 = sshll.u32 %s31_s16, 4  ;;  %s50_s19 = sshra.s32 %s958_s24, 3 }
  0x18   :  { %s37_s22 = sadd.s32 %s732_s18, %s34_s17  ;;  %s53_s25 = sand.u32 7, %s958_s24 }
  0x19   :  { %s38_s0 = scalar_lea.vmem %s1140_s1, %s37_s22  ;;  %s733_s12 = sshll.u32 %s50_s19, 4 }
  0x1a   :  { %753 = vmatpush3.bf16.msra.mxu0 %v815_v5  ;;  %v39_v17 = vld [vmem:[%s38_s0] ss:$8 sm:$0x3]  ;;  %s56_s13 = sadd.s32 %s733_s12, %s53_s25  ;;  %s64_s6 = sshra.s32 %s963_s27, 3 }
  0x1b   :  { %754 = vmatprep.subr.bf16.mxu0 %v816_v6  ;;  %44 = vst.msk [vmem:[#allocation2] ss:$8 sm:$0x3] %vm954_vm0, %v39_v17  ;;  %s57_s24 = scalar_lea.vmem %s1140_s1, %s56_s13  ;;  %s67_s17 = sand.u32 7, %s963_s27 }
  0x1e   :  { %755 = vmatpush3.bf16.msra.mxu0 %v817_v7 }
  0x1f   :  { %756 = vmatprep.subr.bf16.mxu0 %v818_v8 }
  0x22   :  { %757 = vmatpush3.bf16.msra.mxu0 %v819_v10 }
  0x23   :  { %758 = vmatprep.subr.bf16.mxu0 %v820_v11 }
  0x26   :  { %759 = vmatpush3.bf16.msra.mxu0 %v821_v13 }
  0x27   :  { %760 = vmatprep.subr.bf16.mxu0 %v822_v14 }
  0x2a   :  { %761 = vmatpush3.bf16.msra.mxu0 %v823_v15 }
  0x2b   :  { %17 = vsyncpa [#allocation6], 0  ;;  %762 = vmatprep.subr.bf16.mxu0 %v824_v16  ;;  %v58_v19 = vld [vmem:[%s57_s24] ss:$8 sm:$0x3]  ;;  %s734_s18 = sshll.u32 %s64_s6, 4 }
  0x2c   :  { %s78_s19 = sshra.s32 %s965_s28, 3  ;;  %60 = vst.msk [vmem:[#allocation2 + $0x1] ss:$8 sm:$0x3] %vm954_vm0, %v58_v19  ;;  %s70_s2 = sadd.s32 %s734_s18, %s67_s17  ;;  %v826_v40 = vld [vmem:[%s1143_s4] sm:$0xff]   ;;  %v873_v41 = vmov 0.0  }
  0x2d   :  { %s81_s5 = sand.u32 7, %s965_s28  ;;  %s71_s27 = scalar_lea.vmem %s1140_s1, %s70_s2  ;;  %779 = vmatprep.subr.bf16.mxu1 %v873_v41  ;;  %v827_v42 = vld [vmem:[%s1143_s4 + $0x8] sm:$0xff]   ;;  %v828_v43 = vld [vmem:[%s1143_s4 + $0x10] sm:$0xff]   ;;  %v829_v44 = vld [vmem:[%s1143_s4 + $0x18] sm:$0xff]   ;;  %vm876_vm1 = vmmov 0   ;;  %vm469_vm2 = vcmask 130048  }
  0x2e   :  { %s735_s25 = sshll.u32 %s78_s19, 4  ;;  %763 = vmatpush3.bf16.msra.mxu0 %v825_v18  ;;  %v72_v20 = vld [vmem:[%s71_s27] ss:$8 sm:$0x3]  ;;  %s92_s29 = sshra.s32 %s970_s30, 3  ;;  %780 = vmatpush3.bf16.msra.mxu1 %v826_v40  ;;  %v832_v50 = vld [vmem:[%s1143_s4 + $0x30] sm:$0xff]  }
  0x2f   :  { %s84_s26 = sadd.s32 %s735_s25, %s81_s5  ;;  %74 = vst.msk [vmem:[#allocation2 + $0x2] ss:$8 sm:$0x3] %vm954_vm0, %v72_v20  ;;  %s95_s13 = sand.u32 7, %s970_s30  ;;  %781 = vmatprep.subr.bf16.mxu1 %v873_v41  ;;  %v830_v45 = vld [vmem:[%s1143_s4 + $0x20] sm:$0xff]   ;;  %v831_v46 = vld [vmem:[%s1143_s4 + $0x28] sm:$0xff]   ;;  %795 = vmatprep.mubr.msk.bf16.mxu1 %vm876_vm1, %v873_v41 }
  0x30   :  { %s85_s12 = scalar_lea.vmem %s1140_s1, %s84_s26  ;;  %s736_s28 = sshll.u32 %s92_s29, 4  ;;  %v706_v48 = vld [vmem:[%s1142_s3] ss:$0 sm:$0xff]  ;;  %v833_v56 = vld [vmem:[%s1143_s4 + $0x38] sm:$0xff]   ;;  %vm471_vm3 = vcmask 261120   ;;  %vm473_vm4 = vcmask 392192  }
  0x31   :  { %v86_v21 = vld [vmem:[%s85_s12] ss:$8 sm:$0x3]  ;;  %s106_s23 = sshra.s32 %s972_s7, 3  ;;  %s98_s16 = sadd.s32 %s736_s28, %s95_s13  ;;  %vm475_vm5 = vcmask 523264   ;;  %vm477_vm6 = vcmask 654336  }
  0x32   :  { %88 = vst.msk [vmem:[#allocation2 + $0x3] ss:$8 sm:$0x3] %vm954_vm0, %v86_v21  ;;  %s109_s20 = sand.u32 7, %s972_s7  ;;  %s99_s18 = scalar_lea.vmem %s1140_s1, %s98_s16  ;;  %782 = vmatpush3.bf16.msra.mxu1 %v827_v42  ;;  %vm479_vm7 = vcmask 785408   ;;  %vm481_vm8 = vcmask 916480  }
  0x33   :  { %s737_s19 = sshll.u32 %s106_s23, 4  ;;  %v100_v22 = vld [vmem:[%s99_s18] ss:$8 sm:$0x3]  ;;  %s120_s5 = sshra.s32 %s974_s8, 3  ;;  %783 = vmatprep.subr.bf16.mxu1 %v873_v41  ;;  %vm595_vm9 = vcmask 17408  }
  0x34   :  { %s112_s2 = sadd.s32 %s737_s19, %s109_s20  ;;  %102 = vst.msk [vmem:[#allocation2 + $0x4] ss:$8 sm:$0x3] %vm954_vm0, %v100_v22  ;;  %s123_s27 = sand.u32 7, %s974_s8 }
  0x35   :  { %s113_s22 = scalar_lea.vmem %s1140_s1, %s112_s2  ;;  %s738_s7 = sshll.u32 %s120_s5, 4 }
  0x36   :  { %v114_v23 = vld [vmem:[%s113_s22] ss:$8 sm:$0x3]  ;;  %s134_s25 = sshra.s32 %s976_s9, 3  ;;  %s126_s26 = sadd.s32 %s738_s7, %s123_s27  ;;  %784 = vmatpush3.bf16.msra.mxu1 %v828_v43 }
  0x37   :  { %116 = vst.msk [vmem:[#allocation2 + $0x5] ss:$8 sm:$0x3] %vm954_vm0, %v114_v23  ;;  %s137_s29 = sand.u32 7, %s976_s9  ;;  %s127_s12 = scalar_lea.vmem %s1140_s1, %s126_s26  ;;  %785 = vmatprep.subr.bf16.mxu1 %v873_v41 }
  0x38   :  { %s739_s13 = sshll.u32 %s134_s25, 4  ;;  %v128_v24 = vld [vmem:[%s127_s12] ss:$8 sm:$0x3]  ;;  %s148_s23 = sshra.s32 %s978_s10, 3 }
  0x39   :  { %s140_s28 = sadd.s32 %s739_s13, %s137_s29  ;;  %130 = vst.msk [vmem:[#allocation2 + $0x6] ss:$8 sm:$0x3] %vm954_vm0, %v128_v24  ;;  %s151_s24 = sand.u32 7, %s978_s10 }
  0x3a   :  { %s141_s20 = scalar_lea.vmem %s1140_s1, %s140_s28  ;;  %s740_s9 = sshll.u32 %s148_s23, 4  ;;  %786 = vmatpush3.bf16.msra.mxu1 %v829_v44 }
  0x3b   :  { %v142_v25 = vld [vmem:[%s141_s20] ss:$8 sm:$0x3]  ;;  %s162_s17 = sshra.s32 %s980_s11, 3  ;;  %s154_s18 = sadd.s32 %s740_s9, %s151_s24  ;;  %787 = vmatprep.subr.bf16.mxu1 %v873_v41 }
  0x3c   :  { %144 = vst.msk [vmem:[#allocation2 + $0x7] ss:$8 sm:$0x3] %vm954_vm0, %v142_v25  ;;  %s165_s19 = sand.u32 7, %s980_s11  ;;  %s155_s30 = scalar_lea.vmem %s1140_s1, %s154_s18 }
  0x3d   :  { %s741_s21 = sshll.u32 %s162_s17, 4  ;;  %v156_v26 = vld [vmem:[%s155_s30] ss:$8 sm:$0x3]  ;;  %s176_s27 = sshra.s32 %s985_s14, 3 }
  0x3e   :  { %s168_s22 = sadd.s32 %s741_s21, %s165_s19  ;;  %158 = vst.msk [vmem:[#allocation2 + $0x10] ss:$8 sm:$0x3] %vm954_vm0, %v156_v26  ;;  %s179_s26 = sand.u32 7, %s985_s14  ;;  %788 = vmatpush3.bf16.msra.mxu1 %v830_v45 }
  0x3f   :  { %s169_s25 = scalar_lea.vmem %s1140_s1, %s168_s22  ;;  %s742_s29 = sshll.u32 %s176_s27, 4  ;;  %789 = vmatprep.subr.bf16.mxu1 %v873_v41 }
  0x40   :  { %v170_v27 = vld [vmem:[%s169_s25] ss:$8 sm:$0x3]  ;;  %s190_s6 = sshra.s32 %s987_s15, 3  ;;  %s182_s11 = sadd.s32 %s742_s29, %s179_s26 }
  0x41   :  { %172 = vst.msk [vmem:[#allocation2 + $0x11] ss:$8 sm:$0x3] %vm954_vm0, %v170_v27  ;;  %s193_s0 = sand.u32 7, %s987_s15  ;;  %s183_s28 = scalar_lea.vmem %s1140_s1, %s182_s11 }
  0x42   :  { %s743_s23 = sshll.u32 %s190_s6, 4  ;;  %v184_v28 = vld [vmem:[%s183_s28] ss:$8 sm:$0x3]  ;;  %s694_s16 = sld [smem:[#allocation4 + $0x6]]  ;;  %790 = vmatpush3.bf16.msra.mxu1 %v831_v46 }
  0x43   :  { %s196_s8 = sadd.s32 %s743_s23, %s193_s0  ;;  %186 = vst.msk [vmem:[#allocation2 + $0x12] ss:$8 sm:$0x3] %vm954_vm0, %v184_v28  ;;  %s697_s9 = sld [smem:[#allocation4 + $0xe]]  ;;  %v259_v34 = vld [vmem:[#allocation2 + $0x8] sm:$0xff]  ;;  %v258_v35 = vld [vmem:[#allocation2] sm:$0xff]  ;;  %791 = vmatprep.subr.bf16.mxu1 %v873_v41 }
  0x44   :  { %s197_s24 = scalar_lea.vmem %s1140_s1, %s196_s8  ;;  %s700_s17 = sld [smem:[#allocation4 + $0x7]] }
  0x45   :  { %v198_v29 = vld [vmem:[%s197_s24] ss:$8 sm:$0x3]  ;;  %s703_s15 = sld [smem:[#allocation4 + $0xf]]  ;;  %s874_s3 = smov 48  }
  0x46   :  { %200 = vst.msk [vmem:[#allocation2 + $0x13] ss:$8 sm:$0x3] %vm954_vm0, %v198_v29  ;;  %792 = vmatpush3.bf16.msra.mxu1 %v832_v50  ;;  %s879_s8 = smov 96   ;;  %s880_s4 = smov 80  }
  0x47   :  { %793 = vmatprep.subr.bf16.mxu1 %v873_v41 }
  0x48   :  { %s204_s18 = sshra.s32 %s694_s16, 3  ;;  %s207_s19 = sand.u32 7, %s694_s16 }
  0x49   :  { %s744_s2 = sshll.u32 %s204_s18, 4  ;;  %s218_s5 = sshra.s32 %s697_s9, 3 }
  0x4a   :  { %s210_s30 = sadd.s32 %s744_s2, %s207_s19  ;;  %s221_s21 = sand.u32 7, %s697_s9  ;;  %794 = vmatpush3.bf16.msra.mxu1 %v833_v56 }
  0x4b   :  { %s211_s10 = scalar_lea.vmem %s1140_s1, %s210_s30  ;;  %s745_s7 = sshll.u32 %s218_s5, 4 }
  0x4c   :  { %v212_v30 = vld [vmem:[%s211_s10] ss:$8 sm:$0x3]  ;;  %s224_s25 = sadd.s32 %s745_s7, %s221_s21  ;;  %s232_s26 = sshra.s32 %s700_s17, 3 }
  0x4d   :  { %214 = vst.msk [vmem:[#allocation2 + $0x14] ss:$8 sm:$0x3] %vm954_vm0, %v212_v30  ;;  %s225_s11 = scalar_lea.vmem %s1140_s1, %s224_s25  ;;  %s235_s0 = sand.u32 7, %s700_s17 }
  0x4e   :  { %v226_v31 = vld [vmem:[%s225_s11] ss:$8 sm:$0x3]  ;;  %s746_s12 = sshll.u32 %s232_s26, 4  ;;  %s246_s13 = sshra.s32 %s703_s15, 3 }
  0x4f   :  { %228 = vst.msk [vmem:[#allocation2 + $0x15] ss:$8 sm:$0x3] %vm954_vm0, %v226_v31  ;;  %s238_s28 = sadd.s32 %s746_s12, %s235_s0  ;;  %s249_s23 = sand.u32 7, %s703_s15 }
  0x50   :  { %s239_s14 = scalar_lea.vmem %s1140_s1, %s238_s28  ;;  %s747_s20 = sshll.u32 %s246_s13, 4 }
  0x51   :  { %v240_v32 = vld [vmem:[%s239_s14] ss:$8 sm:$0x3]  ;;  %s252_s24 = sadd.s32 %s747_s20, %s249_s23  ;;  %s875_s13 = smov 16  }
  0x52   :  { %242 = vst.msk [vmem:[#allocation2 + $0x16] ss:$8 sm:$0x3] %vm954_vm0, %v240_v32  ;;  %s253_s18 = scalar_lea.vmem %s1140_s1, %s252_s24  ;;  %s877_s28 = smov 64  }
  0x53   :  { %v254_v33 = vld [vmem:[%s253_s18] ss:$8 sm:$0x3]  ;;  %s878_s23 = smov 32   ;;  %s881_s16 = smov 112  }
  0x54   :  { %256 = vst.msk [vmem:[#allocation2 + $0x17] ss:$8 sm:$0x3] %vm954_vm0, %v254_v33  ;;  %s1151_s24 = sld [smem:[#allocation9_spill]]  ;;  %s882_s9 = smov [#allocation5]  }
  0x55   :  { %s603_s17 = sshll.u32 %s882_s9, 4  ;;  %s604_s17 = int_to_ptr.vmem [resolvable:$true] %s603_s17 }
  0x56   :  { %s846_s18 = scalar_lea.vmem %s604_s17, 32  ;;  %p851_p6 = scmp.lt.s32.totalorder %s604_s17, %s604_s17 }
  0x57   :  { %p847_p5 = scmp.ne.s32.totalorder %s604_s17, %s846_s18  ;;  %p852_p7 = scmp.lt.s32.totalorder %s846_s18, %s846_s18 }
  0x59   :  { %p853_p8 = por %p852_p7, %p851_p6 }
  0x5a   :  { %v723_v15 = vld [vmem:[%s1151_s24] ss:$0 sm:$0xff] }
  0x5b   :  { %v261_v36 = vld [vmem:[#allocation2 + $0x18] sm:$0xff]  ;;  %v260_v37 = vld [vmem:[#allocation2 + $0x10] sm:$0xff]  ;;  %p854_p9 = pnand %p853_p8, %p847_p5 }
  0x5c   :  { %v263_v38 = vpack.c.bf16 %v261_v36, %v259_v34  ;;  %v262_v39 = vpack.c.bf16 %v260_v37, %v258_v35 }
  0x5e   :  { %431 = vmatprep.mubr.bf16.mxu0 %v263_v38 }
  0x5f   :  { %432 = vmatmul.mubr.bf16.vlgmr.msra.gmra.mrb[0].mxu0 %v262_v39 }
 0x132   :  { %v764_v47 = vpop.f32.mrb[0].mxu0 }
 0x133   :  { %v765_v49 = vpop.f32.mrb[1].mxu0 }
 0x134   :  { %v766_v51 = vadd.f32 %v765_v49, %v764_v47  ;;  %v767_v52 = vpop.f32.mrb[2].mxu0 }
 0x135   :  { %v768_v53 = vpop.f32.mrb[3].mxu0 }
 0x136   :  { %v434_v54 = vadd.f32 %v766_v51, %v706_v48  ;;  %v769_v55 = vadd.f32 %v768_v53, %v767_v52 }
 0x138   :  { %v449_v57 = vrot.slane %v434_v54, 6  ;;  %v441_v58 = vrot.slane %v434_v54, 2  ;;  %v437_v59 = vadd.f32 %v769_v55, %v706_v48  ;;  %v445_v60 = vrot.slane %v434_v54, 4 }
 0x13a   :  { %450 = vrot.lane.b32.xlu1 %v449_v57, %s874_s3  ;;  %442 = vrot.lane.b32.xlu0 %v441_v58, %s875_s13  ;;  %v461_v61 = vrot.slane %v437_v59, 4  ;;  %v457_v62 = vrot.slane %v437_v59, 2  ;;  %v465_v63 = vrot.slane %v437_v59, 6 }
 0x13e   :  { %454 = vrot.lane.b32.xlu1 %v437_v59, %s877_s28  ;;  %446 = vrot.lane.b32.xlu0 %v445_v60, %s878_s23 }
 0x142   :  { %462 = vrot.lane.b32.xlu1 %v461_v61, %s879_s8  ;;  %458 = vrot.lane.b32.xlu0 %v457_v62, %s880_s4 }
 0x146   :  { %466 = vrot.lane.b32.xlu0 %v465_v63, %s881_s16 }
 0x1ac   :  { %v451_v0 = vpop.permute.xlu1 %450  ;;  %v443_v1 = vpop.permute.xlu0 %442 }
 0x1ad   :  { %v470_v2 = vsel %vm469_vm2, %v434_v54, %v443_v1 }
 0x1b0   :  { %v455_v3 = vpop.permute.xlu1 %454  ;;  %v447_v4 = vpop.permute.xlu0 %446 }
 0x1b1   :  { %v472_v5 = vsel %vm471_vm3, %v470_v2, %v447_v4 }
 0x1b2   :  { %v474_v6 = vsel %vm473_vm4, %v472_v5, %v451_v0 }
 0x1b3   :  { %v476_v7 = vsel %vm475_vm5, %v474_v6, %v455_v3 }
 0x1b4   :  { %v459_v8 = vpop.permute.xlu0 %458  ;;  %v463_v9 = vpop.permute.xlu1 %462 }
 0x1b5   :  { %v478_v10 = vsel %vm477_vm6, %v476_v7, %v459_v8 }
 0x1b6   :  { %v480_v11 = vsel %vm479_vm7, %v478_v10, %v463_v9 }
 0x1b8   :  { %v467_v12 = vpop.permute.xlu0 %466 }
 0x1b9   :  { %v482_v13 = vsel %vm481_vm8, %v480_v11, %v467_v12 }
 0x1ba   :  { %v483_v14 = vpack.c.bf16 %v482_v13, %v482_v13 }
 0x1bc   :  { %796 = vmatmul.mubr.bf16.vlgmr.msra.gmra.mrb[0].mxu1 %v483_v14 }
 0x28f   :  { %v589_v16 = vpop.f32.mrb[0].mxu1 }
 0x290   :  { %v590_v17 = vadd.f32 %v723_v15, %v589_v16  ;;  %v797_v18 = vpop.f32.mrb[1].mxu1 }
 0x291   :  { %v592_v19 = vpop.f32.mrb[2].mxu1 }
 0x292   :  { %v798_v20 = vpop.f32.mrb[3].mxu1  ;;  %596 = vst.msk [vmem:[#allocation5] sm:$0x3] %vm595_vm9, %v590_v17 }
 0x293   :  { %857 = shalt.err (!%p854_p9)
}
 0x294   :  { %s1152_s1 = sld [smem:[#allocation10_spill]] }
 0x29a   :  { %s858_s2 = scalar_lea.hbm %s1152_s1, 32 }
 0x29b   :  { %p859_p10 = scmp.ne.s32.totalorder %s1152_s1, %s858_s2  ;;  %p862_p11 = scmp.lt.u32.totalorder %s858_s2, %s1152_s1 }
 0x29d   :  { %p864_p12 = pnand %p862_p11, %p859_p10 }
 0x29f   :  { %867 = shalt.err (!%p864_p12)
}
 0x2a0   :  { %606 = dma.vmem_to_hbm [thread:$0]  %s604_s17, 32, %s1152_s1, [#allocation6]  }
 0x2a1   :  { %870 = dma.done.wait [#allocation6], 32  }
 0x2a2   :  { %871 = vsyncadd [#allocation6], 4294967264 }
 0x2a3   :  { %610 = vsyncpa [#allocation6], 1 }

</bundles_post_ra>
